<compile_context>
chip_gen: v5e
topology: v5e:2x2
jax: 0.10.0
libtpu: 0.0.40
codegen_flags: <defaults>
</compile_context>

<pallas_src>
import jax
import jax.numpy as jnp
import numpy as np
from jax.experimental import pallas as pl
from jax.experimental.pallas import tpu as pltpu

D_MODEL = 4        # channels per branch (C)
KERNEL = 5         # conv kernel size
PAD = KERNEL - 1   # replication padding on both sides
B = 2              # batch
L = 16             # input sequence length (even)
S = L // 2         # even/odd sequence length


# ---------------------------------------------------------------------------
# Paired CausalConvBlock on a (S, 2C) channels-last tile.
# The two independent CausalConvBlocks of a stage run side-by-side in the two
# lane halves; weights are pre-packed (block- / anti-block-diagonal) so each
# conv layer is ONE im2col matmul.
#   w1, w2  : (K*2C, 2C) packed per-tap matrices
#   bias1/2 : (1, 2C)
# Dropout(p=0.0) is the identity and omitted.
# ---------------------------------------------------------------------------
def _paired_causal_conv_block(x, w1, bias1, w2, bias2):
    s, c2 = x.shape

    # ReplicationPad1d((PAD, PAD)) along the sequence (sublane) axis.
    pad_l = jnp.broadcast_to(x[:1, :], (PAD, c2))
    pad_r = jnp.broadcast_to(x[s - 1:, :], (PAD, c2))
    x_pad = jnp.concatenate([pad_l, x, pad_r], axis=0)            # (S+2*PAD, 2C)

    # Conv1d #1 as a single im2col matmul: valid conv -> length S + PAD.
    s1 = s + PAD
    cols1 = jnp.concatenate([x_pad[k:k + s1, :] for k in range(KERNEL)], axis=-1)
    y = jnp.dot(cols1, w1, preferred_element_type=jnp.float32) + bias1
    y = jnp.where(y > 0, y, 0.01 * y)                             # LeakyReLU(0.01)

    # Conv1d #2 as a single im2col matmul: valid conv -> length S.
    cols2 = jnp.concatenate([y[k:k + s, :] for k in range(KERNEL)], axis=-1)
    z = jnp.dot(cols2, w2, preferred_element_type=jnp.float32) + bias2
    return jnp.tanh(z)


# ---------------------------------------------------------------------------
# Pallas kernel: whole SCIBlock, all batch elements, one invocation.
#   x_ref  : (B, S, 2C)   fused even|odd input
#   w_ref  : (4, K*2C, 2C) packed conv weights (stage1 l1/l2, stage2 l1/l2)
#   b_ref  : (4, 2C)       packed biases
#   out_ref: (B, S, 2C)   fused even_update|odd_update output
# ---------------------------------------------------------------------------
def sciblock_kernel(x_ref, w_ref, b_ref, out_ref):
    bsz, _, c2 = x_ref.shape
    c = c2 // 2
    w = w_ref[...]                      # (4, K*2C, 2C)
    bias = b_ref[...]                   # (4, 2C)

    lane = jax.lax.broadcasted_iota(jnp.int32, (1, c2), 1)
    sign = jnp.where(lane < c, 1.0, -1.0)   # +1 on even half, -1 on odd half

    for i in range(bsz):                # static unroll; bsz is tiny (=2)
        x = x_ref[i]                    # (S, 2C): even cols 0:C, odd cols C:2C
        # Stage 1 gates: cols 0:C = modules_even(x_odd), C:2C = modules_odd(x_even)
        g = _paired_causal_conv_block(x, w[0], bias[0:1, :], w[1], bias[1:2, :])
        x_t = x * jnp.exp(g)            # [x_even_temp | x_odd_temp]
        # Stage 2: cols 0:C = interactor_even(x_odd_temp),
        #          cols C:2C = interactor_odd(x_even_temp)
        h = _paired_causal_conv_block(x_t, w[2], bias[2:3, :], w[3], bias[3:4, :])
        out_ref[i] = x_t + sign * h     # [x_even_update | x_odd_update]


# ---------------------------------------------------------------------------
# Wrapper: free reshape to fused even|odd layout + single pallas_call.
# ---------------------------------------------------------------------------
@jax.jit
def sciblock_forward(x, w_packed, b_packed):
    bsz, l, c = x.shape
    s = l // 2
    # Free view: (B, L, C) -> (B, S, 2C); even samples -> cols 0:C, odd -> C:2C.
    x2 = x.reshape(bsz, s, 2 * c)

    vmem = pl.BlockSpec(memory_space=pltpu.MemorySpace.VMEM)
    fused = pl.pallas_call(
        sciblock_kernel,
        out_shape=jax.ShapeDtypeStruct((bsz, s, 2 * c), jnp.float32),
        in_specs=[vmem, vmem, vmem],
        out_specs=vmem,
    )(x2, w_packed, b_packed)

    # De-interleave (contiguous last-dim slices).
    return fused[..., :c], fused[..., c:]


# ---------------------------------------------------------------------------
# Deterministic parameter init (torch Conv1d default: U(-1/sqrt(fan_in), +)).
# Torch weight layout: (out_ch, in_ch, K).
# Block order: 0=modules_even, 1=modules_odd, 2=interactor_even, 3=interactor_odd.
# ---------------------------------------------------------------------------
def init_params(key):
    bound = 1.0 / np.sqrt(D_MODEL * KERNEL)
    keys = jax.random.split(key, 16)
    w1_t, b1_t, w2_t, b2_t = [], [], [], []
    for j in range(4):
        k0, k1, k2, k3 = keys[4 * j:4 * j + 4]
        w1_t.append(jax.random.uniform(k0, (D_MODEL, D_MODEL, KERNEL),
                                       jnp.float32, -bound, bound))
        b1_t.append(jax.random.uniform(k1, (D_MODEL,), jnp.float32, -bound, bound))
        w2_t.append(jax.random.uniform(k2, (D_MODEL, D_MODEL, KERNEL),
                                       jnp.float32, -bound, bound))
        b2_t.append(jax.random.uniform(k3, (D_MODEL,), jnp.float32, -bound, bound))
    return (jnp.stack(w1_t), jnp.stack(b1_t), jnp.stack(w2_t), jnp.stack(b2_t))


def _pack_pair(w_left, b_left, w_right, b_right, cross):
    """Pack two torch-layout (O, I, K) convs into one (K*2C, 2C) im2col matrix.

    'left' writes output columns 0:C, 'right' writes columns C:2C.
    cross=False (block-diagonal):    left reads input cols 0:C, right reads C:2C.
    cross=True  (anti-block-diag.):  left reads input cols C:2C, right reads 0:C.
    Bias is ordered by OUTPUT columns: [b_left | b_right].
    """
    c = D_MODEL
    W = np.zeros((KERNEL * 2 * c, 2 * c), np.float32)
    for k in range(KERNEL):
        r = k * 2 * c
        wl = np.asarray(w_left)[:, :, k].T     # (I, O)
        wr = np.asarray(w_right)[:, :, k].T
        if cross:
            W[r + c:r + 2 * c, 0:c] = wl
            W[r:r + c, c:2 * c] = wr
        else:
            W[r:r + c, 0:c] = wl
            W[r + c:r + 2 * c, c:2 * c] = wr
    bias = np.concatenate([np.asarray(b_left), np.asarray(b_right)])
    return W, bias


def pack_params(w1_t, b1_t, w2_t, b2_t):
    """Torch-layout stacks -> packed (4, K*2C, 2C) weights and (4, 2C) biases.

    Packed layer order:
      0 = stage-1 conv1 (anti-diag: modules_even reads odd half, modules_odd even half)
      1 = stage-1 conv2 (block-diag)
      2 = stage-2 conv1 (anti-diag: interactor_even reads odd half, interactor_odd even half)
      3 = stage-2 conv2 (block-diag)
    """
    Ws, Bs = [], []
    W, bb = _pack_pair(w1_t[0], b1_t[0], w1_t[1], b1_t[1], cross=True)
    Ws.append(W); Bs.append(bb)
    W, bb = _pack_pair(w2_t[0], b2_t[0], w2_t[1], b2_t[1], cross=False)
    Ws.append(W); Bs.append(bb)
    W, bb = _pack_pair(w1_t[2], b1_t[2], w1_t[3], b1_t[3], cross=True)
    Ws.append(W); Bs.append(bb)
    W, bb = _pack_pair(w2_t[2], b2_t[2], w2_t[3], b2_t[3], cross=False)
    Ws.append(W); Bs.append(bb)
    return jnp.asarray(np.stack(Ws)), jnp.asarray(np.stack(Bs))


# ---------------------------------------------------------------------------
# Pure-JAX reference (lax.conv) for a correctness cross-check.
# ---------------------------------------------------------------------------
def ref_ccb(x_bsc, w1_oik, b1, w2_oik, b2):
    x = jnp.transpose(x_bsc, (0, 2, 1))                          # (B, C, S)
    x = jnp.pad(x, ((0, 0), (0, 0), (PAD, PAD)), mode="edge")
    dn = ("NCH", "OIH", "NCH")
    hi = jax.lax.Precision.HIGHEST
    y = jax.lax.conv_general_dilated(x, w1_oik, (1,), "VALID",
                                     dimension_numbers=dn,
                                     precision=hi) + b1[None, :, None]
    y = jnp.where(y > 0, y, 0.01 * y)
    z = jax.lax.conv_general_dilated(y, w2_oik, (1,), "VALID",
                                     dimension_numbers=dn,
                                     precision=hi) + b2[None, :, None]
    return jnp.transpose(jnp.tanh(z), (0, 2, 1))


def ref_forward(x, w1_t, b1_t, w2_t, b2_t):
    xe, xo = x[:, ::2, :], x[:, 1::2, :]
    xe_t = xe * jnp.exp(ref_ccb(xo, w1_t[0], b1_t[0], w2_t[0], b2_t[0]))
    xo_t = xo * jnp.exp(ref_ccb(xe, w1_t[1], b1_t[1], w2_t[1], b2_t[1]))
    even_u = xe_t + ref_ccb(xo_t, w1_t[2], b1_t[2], w2_t[2], b2_t[2])
    odd_u = xo_t - ref_ccb(xe_t, w1_t[3], b1_t[3], w2_t[3], b2_t[3])
    return even_u, odd_u


if __name__ == "__main__":
    key = jax.random.PRNGKey(0)
    k_x, k_p = jax.random.split(key)
    x = jax.random.normal(k_x, (B, L, D_MODEL), dtype=jnp.float32)

    w1_t, b1_t, w2_t, b2_t = init_params(k_p)
    w_packed, b_packed = pack_params(w1_t, b1_t, w2_t, b2_t)

    out_even, out_odd = sciblock_forward(x, w_packed, b_packed)
    jax.block_until_ready((out_even, out_odd))

    ref_even, ref_odd = ref_forward(x, w1_t, b1_t, w2_t, b2_t)
    np.testing.assert_allclose(np.asarray(out_even), np.asarray(ref_even),
                               rtol=1e-4, atol=1e-5)
    np.testing.assert_allclose(np.asarray(out_odd), np.asarray(ref_odd),
                               rtol=1e-4, atol=1e-5)
    assert out_even.shape == (B, S, D_MODEL) and out_odd.shape == (B, S, D_MODEL)
    print("KERNEL_OK")
</pallas_src>

<mosaic_0001>
module attributes {stable_mosaic.version = 11 : i64} {
  func.func @sciblock_kernel(%arg0: memref<2x8x8xf32, #tpu.memory_space<vmem>>, %arg1: memref<4x40x8xf32, #tpu.memory_space<vmem>>, %arg2: memref<4x8xf32, #tpu.memory_space<vmem>>, %arg3: memref<2x8x8xf32, #tpu.memory_space<vmem>>) attributes {dimension_semantics = [], scalar_prefetch = 0 : i64, scratch_operands = 0 : i64, tpu.core_type = #tpu.core_type<tc>} {
    %c0 = arith.constant 0 : index
    %c0_0 = arith.constant 0 : index
    %c0_1 = arith.constant 0 : index
    %0 = vector.load %arg1[%c0, %c0_0, %c0_1] : memref<4x40x8xf32, #tpu.memory_space<vmem>>, vector<4x40x8xf32>
    %c0_2 = arith.constant 0 : index
    %c0_3 = arith.constant 0 : index
    %1 = vector.load %arg2[%c0_2, %c0_3] : memref<4x8xf32, #tpu.memory_space<vmem>>, vector<4x8xf32>
    %2 = tpu.iota {dimensions = array<i32: 1>} : vector<1x8xi32>
    %c4_i32 = arith.constant 4 : i32
    %3 = vector.broadcast %c4_i32 : i32 to vector<1x8xi32>
    %4 = arith.cmpi slt, %2, %3 : vector<1x8xi32>
    %cst = arith.constant 1.000000e+00 : f32
    %cst_4 = arith.constant -1.000000e+00 : f32
    %5 = vector.broadcast %cst : f32 to vector<1x8xf32>
    %6 = vector.broadcast %cst_4 : f32 to vector<1x8xf32>
    %7 = arith.select %4, %5, %6 : vector<1x8xi1>, vector<1x8xf32>
    %c0_5 = arith.constant 0 : index
    %c0_6 = arith.constant 0 : index
    %c0_7 = arith.constant 0 : index
    %8 = vector.load %arg0[%c0_5, %c0_6, %c0_7] : memref<2x8x8xf32, #tpu.memory_space<vmem>>, vector<1x8x8xf32>
    %9 = vector.shape_cast %8 : vector<1x8x8xf32> to vector<8x8xf32>
    %10 = vector.extract_strided_slice %0 {offsets = [0, 0, 0], sizes = [1, 40, 8], strides = [1, 1, 1]} : vector<4x40x8xf32> to vector<1x40x8xf32>
    %11 = vector.shape_cast %10 : vector<1x40x8xf32> to vector<40x8xf32>
    %12 = vector.extract_strided_slice %1 {offsets = [0, 0], sizes = [1, 8], strides = [1, 1]} : vector<4x8xf32> to vector<1x8xf32>
    %13 = vector.extract_strided_slice %0 {offsets = [1, 0, 0], sizes = [1, 40, 8], strides = [1, 1, 1]} : vector<4x40x8xf32> to vector<1x40x8xf32>
    %14 = vector.shape_cast %13 : vector<1x40x8xf32> to vector<40x8xf32>
    %15 = vector.extract_strided_slice %1 {offsets = [1, 0], sizes = [1, 8], strides = [1, 1]} : vector<4x8xf32> to vector<1x8xf32>
    %16 = vector.extract_strided_slice %9 {offsets = [0, 0], sizes = [1, 8], strides = [1, 1]} : vector<8x8xf32> to vector<1x8xf32>
    %17 = vector.shape_cast %16 : vector<1x8xf32> to vector<1x8xf32>
    %18 = vector.broadcast %17 : vector<1x8xf32> to vector<4x8xf32>
    %19 = vector.extract_strided_slice %9 {offsets = [7, 0], sizes = [1, 8], strides = [1, 1]} : vector<8x8xf32> to vector<1x8xf32>
    %20 = vector.shape_cast %19 : vector<1x8xf32> to vector<1x8xf32>
    %21 = vector.broadcast %20 : vector<1x8xf32> to vector<4x8xf32>
    %22 = tpu.concatenate %18, %9, %21 in 0 : vector<4x8xf32>, vector<8x8xf32>, vector<4x8xf32> -> vector<16x8xf32>
    %23 = vector.extract_strided_slice %22 {offsets = [0, 0], sizes = [12, 8], strides = [1, 1]} : vector<16x8xf32> to vector<12x8xf32>
    %24 = vector.extract_strided_slice %22 {offsets = [1, 0], sizes = [12, 8], strides = [1, 1]} : vector<16x8xf32> to vector<12x8xf32>
    %25 = vector.extract_strided_slice %22 {offsets = [2, 0], sizes = [12, 8], strides = [1, 1]} : vector<16x8xf32> to vector<12x8xf32>
    %26 = vector.extract_strided_slice %22 {offsets = [3, 0], sizes = [12, 8], strides = [1, 1]} : vector<16x8xf32> to vector<12x8xf32>
    %27 = vector.extract_strided_slice %22 {offsets = [4, 0], sizes = [12, 8], strides = [1, 1]} : vector<16x8xf32> to vector<12x8xf32>
    %28 = tpu.concatenate %23, %24, %25, %26, %27 in 1 : vector<12x8xf32>, vector<12x8xf32>, vector<12x8xf32>, vector<12x8xf32>, vector<12x8xf32> -> vector<12x40xf32>
    %cst_8 = arith.constant dense<0.000000e+00> : vector<12x8xf32>
    %29 = tpu.matmul %28, %11, %cst_8 {dimension_numbers = #tpu.dot_dimension_numbers<[1], [0], [0], [1], [0, 0, 1, 1], [], []>} : vector<12x40xf32>, vector<40x8xf32>, vector<12x8xf32> -> vector<12x8xf32>
    %30 = vector.broadcast %12 : vector<1x8xf32> to vector<12x8xf32>
    %31 = arith.addf %29, %30 : vector<12x8xf32>
    %cst_9 = arith.constant 0.000000e+00 : f32
    %32 = vector.broadcast %cst_9 : f32 to vector<12x8xf32>
    %33 = arith.cmpf ogt, %31, %32 : vector<12x8xf32>
    %cst_10 = arith.constant 0.00999999977 : f32
    %34 = vector.broadcast %cst_10 : f32 to vector<12x8xf32>
    %35 = arith.mulf %34, %31 : vector<12x8xf32>
    %36 = arith.select %33, %31, %35 : vector<12x8xi1>, vector<12x8xf32>
    %37 = vector.extract_strided_slice %36 {offsets = [0, 0], sizes = [8, 8], strides = [1, 1]} : vector<12x8xf32> to vector<8x8xf32>
    %38 = vector.extract_strided_slice %36 {offsets = [1, 0], sizes = [8, 8], strides = [1, 1]} : vector<12x8xf32> to vector<8x8xf32>
    %39 = vector.extract_strided_slice %36 {offsets = [2, 0], sizes = [8, 8], strides = [1, 1]} : vector<12x8xf32> to vector<8x8xf32>
    %40 = vector.extract_strided_slice %36 {offsets = [3, 0], sizes = [8, 8], strides = [1, 1]} : vector<12x8xf32> to vector<8x8xf32>
    %41 = vector.extract_strided_slice %36 {offsets = [4, 0], sizes = [8, 8], strides = [1, 1]} : vector<12x8xf32> to vector<8x8xf32>
    %42 = tpu.concatenate %37, %38, %39, %40, %41 in 1 : vector<8x8xf32>, vector<8x8xf32>, vector<8x8xf32>, vector<8x8xf32>, vector<8x8xf32> -> vector<8x40xf32>
    %cst_11 = arith.constant dense<0.000000e+00> : vector<8x8xf32>
    %43 = tpu.matmul %42, %14, %cst_11 {dimension_numbers = #tpu.dot_dimension_numbers<[1], [0], [0], [1], [0, 0, 1, 1], [], []>} : vector<8x40xf32>, vector<40x8xf32>, vector<8x8xf32> -> vector<8x8xf32>
    %44 = vector.broadcast %15 : vector<1x8xf32> to vector<8x8xf32>
    %45 = arith.addf %43, %44 : vector<8x8xf32>
    %46 = math.tanh %45 : vector<8x8xf32>
    %47 = math.exp %46 : vector<8x8xf32>
    %48 = arith.mulf %9, %47 : vector<8x8xf32>
    %49 = vector.extract_strided_slice %0 {offsets = [2, 0, 0], sizes = [1, 40, 8], strides = [1, 1, 1]} : vector<4x40x8xf32> to vector<1x40x8xf32>
    %50 = vector.shape_cast %49 : vector<1x40x8xf32> to vector<40x8xf32>
    %51 = vector.extract_strided_slice %1 {offsets = [2, 0], sizes = [1, 8], strides = [1, 1]} : vector<4x8xf32> to vector<1x8xf32>
    %52 = vector.extract_strided_slice %0 {offsets = [3, 0, 0], sizes = [1, 40, 8], strides = [1, 1, 1]} : vector<4x40x8xf32> to vector<1x40x8xf32>
    %53 = vector.shape_cast %52 : vector<1x40x8xf32> to vector<40x8xf32>
    %54 = vector.extract_strided_slice %1 {offsets = [3, 0], sizes = [1, 8], strides = [1, 1]} : vector<4x8xf32> to vector<1x8xf32>
    %55 = vector.extract_strided_slice %48 {offsets = [0, 0], sizes = [1, 8], strides = [1, 1]} : vector<8x8xf32> to vector<1x8xf32>
    %56 = vector.shape_cast %55 : vector<1x8xf32> to vector<1x8xf32>
    %57 = vector.broadcast %56 : vector<1x8xf32> to vector<4x8xf32>
    %58 = vector.extract_strided_slice %48 {offsets = [7, 0], sizes = [1, 8], strides = [1, 1]} : vector<8x8xf32> to vector<1x8xf32>
    %59 = vector.shape_cast %58 : vector<1x8xf32> to vector<1x8xf32>
    %60 = vector.broadcast %59 : vector<1x8xf32> to vector<4x8xf32>
    %61 = tpu.concatenate %57, %48, %60 in 0 : vector<4x8xf32>, vector<8x8xf32>, vector<4x8xf32> -> vector<16x8xf32>
    %62 = vector.extract_strided_slice %61 {offsets = [0, 0], sizes = [12, 8], strides = [1, 1]} : vector<16x8xf32> to vector<12x8xf32>
    %63 = vector.extract_strided_slice %61 {offsets = [1, 0], sizes = [12, 8], strides = [1, 1]} : vector<16x8xf32> to vector<12x8xf32>
    %64 = vector.extract_strided_slice %61 {offsets = [2, 0], sizes = [12, 8], strides = [1, 1]} : vector<16x8xf32> to vector<12x8xf32>
    %65 = vector.extract_strided_slice %61 {offsets = [3, 0], sizes = [12, 8], strides = [1, 1]} : vector<16x8xf32> to vector<12x8xf32>
    %66 = vector.extract_strided_slice %61 {offsets = [4, 0], sizes = [12, 8], strides = [1, 1]} : vector<16x8xf32> to vector<12x8xf32>
    %67 = tpu.concatenate %62, %63, %64, %65, %66 in 1 : vector<12x8xf32>, vector<12x8xf32>, vector<12x8xf32>, vector<12x8xf32>, vector<12x8xf32> -> vector<12x40xf32>
    %cst_12 = arith.constant dense<0.000000e+00> : vector<12x8xf32>
    %68 = tpu.matmul %67, %50, %cst_12 {dimension_numbers = #tpu.dot_dimension_numbers<[1], [0], [0], [1], [0, 0, 1, 1], [], []>} : vector<12x40xf32>, vector<40x8xf32>, vector<12x8xf32> -> vector<12x8xf32>
    %69 = vector.broadcast %51 : vector<1x8xf32> to vector<12x8xf32>
    %70 = arith.addf %68, %69 : vector<12x8xf32>
    %cst_13 = arith.constant 0.000000e+00 : f32
    %71 = vector.broadcast %cst_13 : f32 to vector<12x8xf32>
    %72 = arith.cmpf ogt, %70, %71 : vector<12x8xf32>
    %cst_14 = arith.constant 0.00999999977 : f32
    %73 = vector.broadcast %cst_14 : f32 to vector<12x8xf32>
    %74 = arith.mulf %73, %70 : vector<12x8xf32>
    %75 = arith.select %72, %70, %74 : vector<12x8xi1>, vector<12x8xf32>
    %76 = vector.extract_strided_slice %75 {offsets = [0, 0], sizes = [8, 8], strides = [1, 1]} : vector<12x8xf32> to vector<8x8xf32>
    %77 = vector.extract_strided_slice %75 {offsets = [1, 0], sizes = [8, 8], strides = [1, 1]} : vector<12x8xf32> to vector<8x8xf32>
    %78 = vector.extract_strided_slice %75 {offsets = [2, 0], sizes = [8, 8], strides = [1, 1]} : vector<12x8xf32> to vector<8x8xf32>
    %79 = vector.extract_strided_slice %75 {offsets = [3, 0], sizes = [8, 8], strides = [1, 1]} : vector<12x8xf32> to vector<8x8xf32>
    %80 = vector.extract_strided_slice %75 {offsets = [4, 0], sizes = [8, 8], strides = [1, 1]} : vector<12x8xf32> to vector<8x8xf32>
    %81 = tpu.concatenate %76, %77, %78, %79, %80 in 1 : vector<8x8xf32>, vector<8x8xf32>, vector<8x8xf32>, vector<8x8xf32>, vector<8x8xf32> -> vector<8x40xf32>
    %cst_15 = arith.constant dense<0.000000e+00> : vector<8x8xf32>
    %82 = tpu.matmul %81, %53, %cst_15 {dimension_numbers = #tpu.dot_dimension_numbers<[1], [0], [0], [1], [0, 0, 1, 1], [], []>} : vector<8x40xf32>, vector<40x8xf32>, vector<8x8xf32> -> vector<8x8xf32>
    %83 = vector.broadcast %54 : vector<1x8xf32> to vector<8x8xf32>
    %84 = arith.addf %82, %83 : vector<8x8xf32>
    %85 = math.tanh %84 : vector<8x8xf32>
    %86 = vector.broadcast %7 : vector<1x8xf32> to vector<8x8xf32>
    %87 = arith.mulf %86, %85 : vector<8x8xf32>
    %88 = arith.addf %48, %87 : vector<8x8xf32>
    %c0_16 = arith.constant 0 : index
    %c0_17 = arith.constant 0 : index
    %c0_18 = arith.constant 0 : index
    %89 = vector.load %arg3[%c0_16, %c0_17, %c0_18] : memref<2x8x8xf32, #tpu.memory_space<vmem>>, vector<1x8x8xf32>
    %90 = vector.shape_cast %89 : vector<1x8x8xf32> to vector<8x8xf32>
    %91 = vector.shape_cast %88 : vector<8x8xf32> to vector<1x8x8xf32>
    tpu.vector_store %arg3[%c0_16, %c0_17, %c0_18], %91 {strides = array<i32>} : memref<2x8x8xf32, #tpu.memory_space<vmem>>, vector<1x8x8xf32>,
    %c1 = arith.constant 1 : index
    %c0_19 = arith.constant 0 : index
    %c0_20 = arith.constant 0 : index
    %92 = vector.load %arg0[%c1, %c0_19, %c0_20] : memref<2x8x8xf32, #tpu.memory_space<vmem>>, vector<1x8x8xf32>
    %93 = vector.shape_cast %92 : vector<1x8x8xf32> to vector<8x8xf32>
    %94 = vector.extract_strided_slice %0 {offsets = [0, 0, 0], sizes = [1, 40, 8], strides = [1, 1, 1]} : vector<4x40x8xf32> to vector<1x40x8xf32>
    %95 = vector.shape_cast %94 : vector<1x40x8xf32> to vector<40x8xf32>
    %96 = vector.extract_strided_slice %1 {offsets = [0, 0], sizes = [1, 8], strides = [1, 1]} : vector<4x8xf32> to vector<1x8xf32>
    %97 = vector.extract_strided_slice %0 {offsets = [1, 0, 0], sizes = [1, 40, 8], strides = [1, 1, 1]} : vector<4x40x8xf32> to vector<1x40x8xf32>
    %98 = vector.shape_cast %97 : vector<1x40x8xf32> to vector<40x8xf32>
    %99 = vector.extract_strided_slice %1 {offsets = [1, 0], sizes = [1, 8], strides = [1, 1]} : vector<4x8xf32> to vector<1x8xf32>
    %100 = vector.extract_strided_slice %93 {offsets = [0, 0], sizes = [1, 8], strides = [1, 1]} : vector<8x8xf32> to vector<1x8xf32>
    %101 = vector.shape_cast %100 : vector<1x8xf32> to vector<1x8xf32>
    %102 = vector.broadcast %101 : vector<1x8xf32> to vector<4x8xf32>
    %103 = vector.extract_strided_slice %93 {offsets = [7, 0], sizes = [1, 8], strides = [1, 1]} : vector<8x8xf32> to vector<1x8xf32>
    %104 = vector.shape_cast %103 : vector<1x8xf32> to vector<1x8xf32>
    %105 = vector.broadcast %104 : vector<1x8xf32> to vector<4x8xf32>
    %106 = tpu.concatenate %102, %93, %105 in 0 : vector<4x8xf32>, vector<8x8xf32>, vector<4x8xf32> -> vector<16x8xf32>
    %107 = vector.extract_strided_slice %106 {offsets = [0, 0], sizes = [12, 8], strides = [1, 1]} : vector<16x8xf32> to vector<12x8xf32>
    %108 = vector.extract_strided_slice %106 {offsets = [1, 0], sizes = [12, 8], strides = [1, 1]} : vector<16x8xf32> to vector<12x8xf32>
    %109 = vector.extract_strided_slice %106 {offsets = [2, 0], sizes = [12, 8], strides = [1, 1]} : vector<16x8xf32> to vector<12x8xf32>
    %110 = vector.extract_strided_slice %106 {offsets = [3, 0], sizes = [12, 8], strides = [1, 1]} : vector<16x8xf32> to vector<12x8xf32>
    %111 = vector.extract_strided_slice %106 {offsets = [4, 0], sizes = [12, 8], strides = [1, 1]} : vector<16x8xf32> to vector<12x8xf32>
    %112 = tpu.concatenate %107, %108, %109, %110, %111 in 1 : vector<12x8xf32>, vector<12x8xf32>, vector<12x8xf32>, vector<12x8xf32>, vector<12x8xf32> -> vector<12x40xf32>
    %cst_21 = arith.constant dense<0.000000e+00> : vector<12x8xf32>
    %113 = tpu.matmul %112, %95, %cst_21 {dimension_numbers = #tpu.dot_dimension_numbers<[1], [0], [0], [1], [0, 0, 1, 1], [], []>} : vector<12x40xf32>, vector<40x8xf32>, vector<12x8xf32> -> vector<12x8xf32>
    %114 = vector.broadcast %96 : vector<1x8xf32> to vector<12x8xf32>
    %115 = arith.addf %113, %114 : vector<12x8xf32>
    %cst_22 = arith.constant 0.000000e+00 : f32
    %116 = vector.broadcast %cst_22 : f32 to vector<12x8xf32>
    %117 = arith.cmpf ogt, %115, %116 : vector<12x8xf32>
    %cst_23 = arith.constant 0.00999999977 : f32
    %118 = vector.broadcast %cst_23 : f32 to vector<12x8xf32>
    %119 = arith.mulf %118, %115 : vector<12x8xf32>
    %120 = arith.select %117, %115, %119 : vector<12x8xi1>, vector<12x8xf32>
    %121 = vector.extract_strided_slice %120 {offsets = [0, 0], sizes = [8, 8], strides = [1, 1]} : vector<12x8xf32> to vector<8x8xf32>
    %122 = vector.extract_strided_slice %120 {offsets = [1, 0], sizes = [8, 8], strides = [1, 1]} : vector<12x8xf32> to vector<8x8xf32>
    %123 = vector.extract_strided_slice %120 {offsets = [2, 0], sizes = [8, 8], strides = [1, 1]} : vector<12x8xf32> to vector<8x8xf32>
    %124 = vector.extract_strided_slice %120 {offsets = [3, 0], sizes = [8, 8], strides = [1, 1]} : vector<12x8xf32> to vector<8x8xf32>
    %125 = vector.extract_strided_slice %120 {offsets = [4, 0], sizes = [8, 8], strides = [1, 1]} : vector<12x8xf32> to vector<8x8xf32>
    %126 = tpu.concatenate %121, %122, %123, %124, %125 in 1 : vector<8x8xf32>, vector<8x8xf32>, vector<8x8xf32>, vector<8x8xf32>, vector<8x8xf32> -> vector<8x40xf32>
    %cst_24 = arith.constant dense<0.000000e+00> : vector<8x8xf32>
    %127 = tpu.matmul %126, %98, %cst_24 {dimension_numbers = #tpu.dot_dimension_numbers<[1], [0], [0], [1], [0, 0, 1, 1], [], []>} : vector<8x40xf32>, vector<40x8xf32>, vector<8x8xf32> -> vector<8x8xf32>
    %128 = vector.broadcast %99 : vector<1x8xf32> to vector<8x8xf32>
    %129 = arith.addf %127, %128 : vector<8x8xf32>
    %130 = math.tanh %129 : vector<8x8xf32>
    %131 = math.exp %130 : vector<8x8xf32>
    %132 = arith.mulf %93, %131 : vector<8x8xf32>
    %133 = vector.extract_strided_slice %0 {offsets = [2, 0, 0], sizes = [1, 40, 8], strides = [1, 1, 1]} : vector<4x40x8xf32> to vector<1x40x8xf32>
    %134 = vector.shape_cast %133 : vector<1x40x8xf32> to vector<40x8xf32>
    %135 = vector.extract_strided_slice %1 {offsets = [2, 0], sizes = [1, 8], strides = [1, 1]} : vector<4x8xf32> to vector<1x8xf32>
    %136 = vector.extract_strided_slice %0 {offsets = [3, 0, 0], sizes = [1, 40, 8], strides = [1, 1, 1]} : vector<4x40x8xf32> to vector<1x40x8xf32>
    %137 = vector.shape_cast %136 : vector<1x40x8xf32> to vector<40x8xf32>
    %138 = vector.extract_strided_slice %1 {offsets = [3, 0], sizes = [1, 8], strides = [1, 1]} : vector<4x8xf32> to vector<1x8xf32>
    %139 = vector.extract_strided_slice %132 {offsets = [0, 0], sizes = [1, 8], strides = [1, 1]} : vector<8x8xf32> to vector<1x8xf32>
    %140 = vector.shape_cast %139 : vector<1x8xf32> to vector<1x8xf32>
    %141 = vector.broadcast %140 : vector<1x8xf32> to vector<4x8xf32>
    %142 = vector.extract_strided_slice %132 {offsets = [7, 0], sizes = [1, 8], strides = [1, 1]} : vector<8x8xf32> to vector<1x8xf32>
    %143 = vector.shape_cast %142 : vector<1x8xf32> to vector<1x8xf32>
    %144 = vector.broadcast %143 : vector<1x8xf32> to vector<4x8xf32>
    %145 = tpu.concatenate %141, %132, %144 in 0 : vector<4x8xf32>, vector<8x8xf32>, vector<4x8xf32> -> vector<16x8xf32>
    %146 = vector.extract_strided_slice %145 {offsets = [0, 0], sizes = [12, 8], strides = [1, 1]} : vector<16x8xf32> to vector<12x8xf32>
    %147 = vector.extract_strided_slice %145 {offsets = [1, 0], sizes = [12, 8], strides = [1, 1]} : vector<16x8xf32> to vector<12x8xf32>
    %148 = vector.extract_strided_slice %145 {offsets = [2, 0], sizes = [12, 8], strides = [1, 1]} : vector<16x8xf32> to vector<12x8xf32>
    %149 = vector.extract_strided_slice %145 {offsets = [3, 0], sizes = [12, 8], strides = [1, 1]} : vector<16x8xf32> to vector<12x8xf32>
    %150 = vector.extract_strided_slice %145 {offsets = [4, 0], sizes = [12, 8], strides = [1, 1]} : vector<16x8xf32> to vector<12x8xf32>
    %151 = tpu.concatenate %146, %147, %148, %149, %150 in 1 : vector<12x8xf32>, vector<12x8xf32>, vector<12x8xf32>, vector<12x8xf32>, vector<12x8xf32> -> vector<12x40xf32>
    %cst_25 = arith.constant dense<0.000000e+00> : vector<12x8xf32>
    %152 = tpu.matmul %151, %134, %cst_25 {dimension_numbers = #tpu.dot_dimension_numbers<[1], [0], [0], [1], [0, 0, 1, 1], [], []>} : vector<12x40xf32>, vector<40x8xf32>, vector<12x8xf32> -> vector<12x8xf32>
    %153 = vector.broadcast %135 : vector<1x8xf32> to vector<12x8xf32>
    %154 = arith.addf %152, %153 : vector<12x8xf32>
    %cst_26 = arith.constant 0.000000e+00 : f32
    %155 = vector.broadcast %cst_26 : f32 to vector<12x8xf32>
    %156 = arith.cmpf ogt, %154, %155 : vector<12x8xf32>
    %cst_27 = arith.constant 0.00999999977 : f32
    %157 = vector.broadcast %cst_27 : f32 to vector<12x8xf32>
    %158 = arith.mulf %157, %154 : vector<12x8xf32>
    %159 = arith.select %156, %154, %158 : vector<12x8xi1>, vector<12x8xf32>
    %160 = vector.extract_strided_slice %159 {offsets = [0, 0], sizes = [8, 8], strides = [1, 1]} : vector<12x8xf32> to vector<8x8xf32>
    %161 = vector.extract_strided_slice %159 {offsets = [1, 0], sizes = [8, 8], strides = [1, 1]} : vector<12x8xf32> to vector<8x8xf32>
    %162 = vector.extract_strided_slice %159 {offsets = [2, 0], sizes = [8, 8], strides = [1, 1]} : vector<12x8xf32> to vector<8x8xf32>
    %163 = vector.extract_strided_slice %159 {offsets = [3, 0], sizes = [8, 8], strides = [1, 1]} : vector<12x8xf32> to vector<8x8xf32>
    %164 = vector.extract_strided_slice %159 {offsets = [4, 0], sizes = [8, 8], strides = [1, 1]} : vector<12x8xf32> to vector<8x8xf32>
    %165 = tpu.concatenate %160, %161, %162, %163, %164 in 1 : vector<8x8xf32>, vector<8x8xf32>, vector<8x8xf32>, vector<8x8xf32>, vector<8x8xf32> -> vector<8x40xf32>
    %cst_28 = arith.constant dense<0.000000e+00> : vector<8x8xf32>
    %166 = tpu.matmul %165, %137, %cst_28 {dimension_numbers = #tpu.dot_dimension_numbers<[1], [0], [0], [1], [0, 0, 1, 1], [], []>} : vector<8x40xf32>, vector<40x8xf32>, vector<8x8xf32> -> vector<8x8xf32>
    %167 = vector.broadcast %138 : vector<1x8xf32> to vector<8x8xf32>
    %168 = arith.addf %166, %167 : vector<8x8xf32>
    %169 = math.tanh %168 : vector<8x8xf32>
    %170 = vector.broadcast %7 : vector<1x8xf32> to vector<8x8xf32>
    %171 = arith.mulf %170, %169 : vector<8x8xf32>
    %172 = arith.addf %132, %171 : vector<8x8xf32>
    %c1_29 = arith.constant 1 : index
    %c0_30 = arith.constant 0 : index
    %c0_31 = arith.constant 0 : index
    %173 = vector.load %arg3[%c1_29, %c0_30, %c0_31] : memref<2x8x8xf32, #tpu.memory_space<vmem>>, vector<1x8x8xf32>
    %174 = vector.shape_cast %173 : vector<1x8x8xf32> to vector<8x8xf32>
    %175 = vector.shape_cast %172 : vector<8x8xf32> to vector<1x8x8xf32>
    tpu.vector_store %arg3[%c1_29, %c0_30, %c0_31], %175 {strides = array<i32>} : memref<2x8x8xf32, #tpu.memory_space<vmem>>, vector<1x8x8xf32>,
    return
  }
}

</mosaic_0001>

<bundles_post_ra>
// kernel: sciblock_forward.1
= control target key start
LH: loop header
LB: loop body
LE: loop exit
PB: predicated region body
PF: predicated region fallthrough
CT: control target
= control target key end

     0   :  { %vm45_vm0 = vcmask 1043456   ;;  %vm50_vm1 = vcmask 1046528   ;;  %vm70_vm2 = vcmask 1044480   ;;  %s676_s14 = smov 8   ;;  %s677_s15 = smov 24   ;;  %vm60_vm3 = vcmask 1045504   ;;  %s1073_s0 = inlined_call_operand.vmem [shape: f32[2,8,8], index: 0, kind: input, shape index: {}]   ;;  %s1074_s1 = inlined_call_operand.vmem [shape: f32[4,40,8], index: 1, kind: input, shape index: {}]   ;;  %s1075_s2 = inlined_call_operand.vmem [shape: f32[4,8], index: 2, kind: input, shape index: {}]   ;;  %s1076_s3 = inlined_call_operand.vmem [shape: f32[2,8,8], index: 3, kind: output, shape index: {}]  }
   0x1   :  { %v704_v0 = vld [vmem:[%s1073_s0] sm:$0xff]  ;;  %s678_s16 = smov 16   ;;  %s679_s17 = smov 32   ;;  %v731_v19 = vld [vmem:[%s1074_s1 + $0x18] sm:$0xff]  ;;  %v737_v20 = vld [vmem:[%s1074_s1 + $0x10] sm:$0xff]  ;;  %vm89_vm4 = vcmask 64512  }
   0x2   :  { %v40_v1 = vperm.slane %v704_v0, 0  ;;  %v41_v2 = vperm.slane %v704_v0, 7  ;;  %v43_v3 = vrot.slane %v704_v0, 4  ;;  %v726_v18 = vld [vmem:[%s1074_s1 + $0x20] sm:$0xff]  ;;  %v744_v21 = vld [vmem:[%s1074_s1 + $0x8] sm:$0xff]  ;;  %vm92_vm5 = vcmask 130048  }
   0x3   :  { %120 = vmatpush.msra.mxu0 %v726_v18  ;;  %v750_v22 = vld [vmem:[%s1074_s1] sm:$0xff]  ;;  %vm95_vm6 = vcmask 195584   ;;  %vm98_vm7 = vcmask 261120   ;;  %vm102_vm8 = vcmask 326656   ;;  %v784_v61 = vld [vmem:[%s1074_s1 + $0x48] sm:$0xff]  ;;  %v795_v63 = vld [vmem:[%s1074_s1 + $0x38] sm:$0xff] }
   0x4   :  { %v46_v4 = vsel %vm45_vm0, %v40_v1, %v43_v3  ;;  %v47_v5 = vsel %vm45_vm0, %v43_v3, %v41_v2  ;;  %v766_v39 = vld [vmem:[%s1075_s2] sm:$0xf]  ;;  %183 = vmatpush.msra.mxu1 %v784_v61  ;;  %v802_v1 = vld [vmem:[%s1074_s1 + $0x30] sm:$0xff]  ;;  %v807_v2 = vld [vmem:[%s1074_s1 + $0x28] sm:$0xff] }
   0x5   :  { %v51_v6 = vrot.slane %v46_v4, 1  ;;  %v52_v7 = vrot.slane %v47_v5, 1  ;;  %v71_v8 = vrot.slane %v46_v4, 3  ;;  %v72_v9 = vrot.slane %v47_v5, 3  ;;  %121 = vmatpush.msra.mxu0 %v731_v19  ;;  %v789_v62 = vld [vmem:[%s1074_s1 + $0x40] sm:$0xff] }
   0x6   :  { %v61_v12 = vrot.slane %v46_v4, 2  ;;  %v62_v13 = vrot.slane %v47_v5, 2  ;;  %v80_v14 = vrot.slane %v46_v4, 4  ;;  %v81_v15 = vrot.slane %v47_v5, 4  ;;  %184 = vmatpush.msra.mxu1 %v789_v62 }
   0x7   :  { %v53_v10 = vsel %vm50_vm1, %v51_v6, %v52_v7  ;;  %v73_v11 = vsel %vm70_vm2, %v71_v8, %v72_v9  ;;  %56 = vrot.lane.b32.xlu2 %v52_v7, %s676_s14  ;;  %122 = vmatpush.msra.mxu0 %v737_v20  ;;  %v769_v40 = vperm.slane %v766_v39, 0 }
   0x8   :  { %54 = vrot.lane.b32.xlu0 %v53_v10, %s676_s14  ;;  %74 = vrot.lane.b32.xlu1 %v73_v11, %s677_s15  ;;  %v63_v16 = vsel %vm60_vm3, %v61_v12, %v62_v13  ;;  %v82_v17 = vsel %vm45_vm0, %v80_v14, %v81_v15  ;;  %v168_v11 = vperm.slane %v766_v39, 1 }
   0x9   :  { %123 = vmatpush.msra.mxu0 %v744_v21  ;;  %185 = vmatpush.msra.mxu1 %v795_v63 }
   0xb   :  { %124 = vmatpush.msra.mxu0 %v750_v22  ;;  %186 = vmatpush.msra.mxu1 %v802_v1 }
   0xd   :  { %187 = vmatpush.msra.mxu1 %v807_v2 }
   0xf   :  { %66 = vrot.lane.b32.xlu2 %v62_v13, %s678_s16  ;;  %415 = vmatpush.msrb.mxu1 %v726_v18 }
  0x10   :  { %64 = vrot.lane.b32.xlu0 %v63_v16, %s678_s16  ;;  %83 = vrot.lane.b32.xlu1 %v82_v17, %s679_s17 }
  0x11   :  { %416 = vmatpush.msrb.mxu1 %v731_v19 }
  0x13   :  { %417 = vmatpush.msrb.mxu1 %v737_v20 }
  0x15   :  { %418 = vmatpush.msrb.mxu1 %v744_v21 }
  0x17   :  { %419 = vmatpush.msrb.mxu1 %v750_v22 }
  0x18   :  { %76 = vrot.lane.b32.xlu0 %v72_v9, %s677_s15  ;;  %85 = vrot.lane.b32.xlu1 %v81_v15, %s679_s17 }
  0x61   :  { %v57_v25 = vpop.permute.xlu2 %56 }
  0x62   :  { %v91_v32 = vsel %vm89_vm4, %v47_v5, %v57_v25  ;;  %v845_v25 = vld [vmem:[%s1073_s0 + $0x8] sm:$0xff] }
  0x69   :  { %v67_v33 = vpop.permute.xlu2 %66 }
  0x6a   :  { %v94_v34 = vsel %vm92_vm5, %v91_v32, %v67_v33 }
  0x7a   :  { %v55_v23 = vpop.permute.xlu0 %54  ;;  %v75_v24 = vpop.permute.xlu1 %74 }
  0x7b   :  { %v90_v26 = vsel %vm89_vm4, %v46_v4, %v55_v23 }
  0x82   :  { %v65_v27 = vpop.permute.xlu0 %64  ;;  %v84_v28 = vpop.permute.xlu1 %83 }
  0x83   :  { %v93_v29 = vsel %vm92_vm5, %v90_v26, %v65_v27 }
  0x84   :  { %v96_v30 = vsel %vm95_vm6, %v93_v29, %v75_v24  ;;  %v345_v29 = vperm.slane %v845_v25, 0 }
  0x85   :  { %v99_v31 = vsel %vm98_vm7, %v96_v30, %v84_v28  ;;  %v348_v30 = vrot.slane %v845_v25, 4 }
  0x86   :  { %640 = vmatmul.msk.f32.vlgmr.msra.gmra.mxu0 %vm102_vm8, %v99_v31  ;;  %v346_v31 = vperm.slane %v845_v25, 7 }
  0x8a   :  { %v77_v35 = vpop.permute.xlu0 %76  ;;  %v86_v36 = vpop.permute.xlu1 %85 }
  0x8b   :  { %v97_v37 = vsel %vm95_vm6, %v94_v34, %v77_v35  ;;  %v350_v35 = vsel %vm45_vm0, %v345_v29, %v348_v30 }
  0x8c   :  { %v100_v38 = vsel %vm98_vm7, %v97_v37, %v86_v36  ;;  %v354_v36 = vrot.slane %v350_v35, 1  ;;  %v861_v37 = vsel %vm45_vm0, %v348_v30, %v346_v31 }
  0x8e   :  { %641 = vmatmul.msk.f32.gmra.mxu0 %vm102_vm8, %v100_v38 }
 0x103   :  { %v126_v41 = vpop.f32.mrf.mxu0 }
 0x104   :  { %v127_v42 = vadd.f32 %v126_v41, %v769_v40 }
 0x106   :  { %v134_v43 = vmul.f32 0.01, %v127_v42  ;;  %vm132_vm9 = vcmp.gt.f32.partialorder %v127_v42, 0.0 }
 0x108   :  { %v136_v46 = vsel %vm132_vm9, %v127_v42, %v134_v43  ;;  %v355_v42 = vrot.slane %v861_v37, 1 }
 0x109   :  { %v152_v49 = vrot.slane %v136_v46, 3  ;;  %v146_v50 = vrot.slane %v136_v46, 2  ;;  %v140_v53 = vrot.slane %v136_v46, 1  ;;  %v158_v59 = vrot.slane %v136_v46, 4 }
 0x10a   :  { %v356_v43 = vsel %vm50_vm1, %v354_v36, %v355_v42 }
 0x10b   :  { %v129_v44 = vpop.f32.mrf.mxu0 }
 0x10c   :  { %v130_v45 = vadd.f32 %v129_v44, %v769_v40 }
 0x10e   :  { %vm133_vm10 = vcmp.gt.f32.partialorder %v130_v45, 0.0  ;;  %v135_v47 = vmul.f32 0.01, %v130_v45 }
 0x110   :  { %v137_v48 = vsel %vm133_vm10, %v130_v45, %v135_v47  ;;  %v363_v45 = vrot.slane %v350_v35, 2  ;;  %v381_v47 = vrot.slane %v350_v35, 4 }
 0x111   :  { %v153_v51 = vrot.slane %v137_v48, 3  ;;  %v147_v52 = vrot.slane %v137_v48, 2  ;;  %v141_v54 = vrot.slane %v137_v48, 1  ;;  %v159_v58 = vrot.slane %v137_v48, 4 }
 0x112   :  { %v372_v48 = vrot.slane %v350_v35, 3 }
 0x113   :  { %v154_v55 = vsel %vm70_vm2, %v152_v49, %v153_v51  ;;  %v148_v56 = vsel %vm60_vm3, %v146_v50, %v147_v52  ;;  %v142_v57 = vsel %vm50_vm1, %v140_v53, %v141_v54  ;;  %v160_v60 = vsel %vm45_vm0, %v158_v59, %v159_v58  ;;  %v887_v54 = vld [vmem:[%s1074_s1 + $0x70] sm:$0xff] }
 0x114   :  { %155 = vrot.lane.b32.xlu1 %v154_v55, %s677_s15  ;;  %149 = vrot.lane.b32.xlu0 %v148_v56, %s678_s16  ;;  %v373_v49 = vrot.slane %v861_v37, 3  ;;  %v382_v50 = vrot.slane %v861_v37, 4  ;;  %v893_v55 = vld [vmem:[%s1074_s1 + $0x68] sm:$0xff]  ;;  %v899_v56 = vld [vmem:[%s1074_s1 + $0x60] sm:$0xff] }
 0x115   :  { %143 = vrot.lane.b32.xlu2 %v142_v57, %s676_s14  ;;  %267 = vmatpush.msra.mxu2 %v887_v54  ;;  %v906_v57 = vld [vmem:[%s1074_s1 + $0x58] sm:$0xff]  ;;  %v915_v58 = vld [vmem:[%s1074_s1 + $0x50] sm:$0xff] }
 0x116   :  { %v383_v52 = vsel %vm45_vm0, %v381_v47, %v382_v50  ;;  %v374_v53 = vsel %vm70_vm2, %v372_v48, %v373_v49  ;;  %560 = vmatpush.msrb.mxu0 %v887_v54 }
 0x117   :  { %268 = vmatpush.msra.mxu2 %v893_v55 }
 0x118   :  { %561 = vmatpush.msrb.mxu0 %v893_v55 }
 0x119   :  { %269 = vmatpush.msra.mxu2 %v899_v56 }
 0x11a   :  { %562 = vmatpush.msrb.mxu0 %v899_v56 }
 0x11b   :  { %270 = vmatpush.msra.mxu2 %v906_v57 }
 0x11c   :  { %563 = vmatpush.msrb.mxu0 %v906_v57 }
 0x11d   :  { %161 = vrot.lane.b32.xlu2 %v160_v60, %s679_s17  ;;  %271 = vmatpush.msra.mxu2 %v915_v58 }
 0x11e   :  { %564 = vmatpush.msrb.mxu0 %v915_v58 }
 0x16f   :  { %v144_v3 = vpop.permute.xlu2 %143 }
 0x170   :  { %v164_v4 = vsel %vm89_vm4, %v136_v46, %v144_v3  ;;  %v364_v46 = vrot.slane %v861_v37, 2 }
 0x172   :  { %v365_v51 = vsel %vm60_vm3, %v363_v45, %v364_v46 }
 0x177   :  { %v162_v8 = vpop.permute.xlu2 %161 }
 0x186   :  { %v156_v5 = vpop.permute.xlu1 %155  ;;  %v150_v6 = vpop.permute.xlu0 %149 }
 0x187   :  { %v165_v7 = vsel %vm92_vm5, %v164_v4, %v150_v6 }
 0x188   :  { %v166_v9 = vsel %vm95_vm6, %v165_v7, %v156_v5 }
 0x189   :  { %v167_v10 = vsel %vm98_vm7, %v166_v9, %v162_v8 }
 0x18a   :  { %642 = vmatmul.msk.f32.vlgmr.msra.gmra.mxu1 %vm102_vm8, %v167_v10 }
 0x207   :  { %v189_v12 = vpop.f32.mrf.mxu1 }
 0x208   :  { %v190_v13 = vadd.f32 %v189_v12, %v168_v11 }
 0x20a   :  { %664 = vtanh.f32 %v190_v13 }
 0x210   :  { %v665_v14 = vpop.eup %664 }
 0x211   :  { %v193_v15 = vmul.f32 1.442695, %v665_v14 }
 0x213   :  { %666 = vpow2.f32 %v193_v15 }
 0x219   :  { %v667_v16 = vpop.eup %666 }
 0x21a   :  { %v825_v17 = vmul.f32 %v667_v16, %v704_v0 }
 0x21c   :  { %v197_v18 = vperm.slane %v825_v17, 7  ;;  %v199_v19 = vrot.slane %v825_v17, 4  ;;  %v196_v20 = vperm.slane %v825_v17, 0 }
 0x21e   :  { %v831_v21 = vsel %vm45_vm0, %v199_v19, %v197_v18  ;;  %v839_v0 = vsel %vm45_vm0, %v196_v20, %v199_v19 }
 0x21f   :  { %v224_v22 = vrot.slane %v831_v21, 3  ;;  %v215_v23 = vrot.slane %v831_v21, 2  ;;  %v206_v24 = vrot.slane %v831_v21, 1  ;;  %v223_v26 = vrot.slane %v839_v0, 3 }
 0x220   :  { %v205_v27 = vrot.slane %v839_v0, 1  ;;  %v214_v28 = vrot.slane %v839_v0, 2  ;;  %v233_v38 = vrot.slane %v831_v21, 4  ;;  %v232_v41 = vrot.slane %v839_v0, 4 }
 0x221   :  { %228 = vrot.lane.b32.xlu0 %v224_v22, %s677_s15  ;;  %219 = vrot.lane.b32.xlu2 %v215_v23, %s678_s16  ;;  %v225_v32 = vsel %vm70_vm2, %v223_v26, %v224_v22 }
 0x222   :  { %210 = vrot.lane.b32.xlu1 %v206_v24, %s676_s14  ;;  %v207_v33 = vsel %vm50_vm1, %v205_v27, %v206_v24  ;;  %v216_v34 = vsel %vm60_vm3, %v214_v28, %v215_v23  ;;  %v234_v44 = vsel %vm45_vm0, %v232_v41, %v233_v38 }
 0x229   :  { %226 = vrot.lane.b32.xlu2 %v225_v32, %s677_s15  ;;  %208 = vrot.lane.b32.xlu0 %v207_v33, %s676_s14 }
 0x22a   :  { %217 = vrot.lane.b32.xlu1 %v216_v34, %s678_s16 }
 0x231   :  { %235 = vrot.lane.b32.xlu0 %v234_v44, %s679_s17  ;;  %357 = vrot.lane.b32.xlu2 %v356_v43, %s676_s14 }
 0x232   :  { %237 = vrot.lane.b32.xlu1 %v233_v38, %s679_s17 }
 0x239   :  { %366 = vrot.lane.b32.xlu0 %v365_v51, %s678_s16  ;;  %384 = vrot.lane.b32.xlu2 %v383_v52, %s679_s17 }
 0x23a   :  { %375 = vrot.lane.b32.xlu1 %v374_v53, %s677_s15 }
 0x241   :  { %359 = vrot.lane.b32.xlu0 %v355_v42, %s676_s14  ;;  %377 = vrot.lane.b32.xlu2 %v373_v49, %s677_s15 }
 0x242   :  { %368 = vrot.lane.b32.xlu1 %v364_v46, %s678_s16 }
 0x249   :  { %386 = vrot.lane.b32.xlu0 %v382_v50, %s679_s17 }
 0x27b   :  { %v220_v59 = vpop.permute.xlu2 %219 }
 0x283   :  { %v227_v4 = vpop.permute.xlu2 %226 }
 0x28b   :  { %v358_v9 = vpop.permute.xlu2 %357 }
 0x28c   :  { %v390_v18 = vsel %vm89_vm4, %v350_v35, %v358_v9  ;;  %v943_v35 = vperm.slane %v766_v39, 2 }
 0x293   :  { %v229_v60 = vpop.permute.xlu0 %228  ;;  %v385_v22 = vpop.permute.xlu2 %384 }
 0x294   :  { %v211_v3 = vpop.permute.xlu1 %210 }
 0x295   :  { %v242_v15 = vsel %vm89_vm4, %v831_v21, %v211_v3 }
 0x296   :  { %v244_v16 = vsel %vm92_vm5, %v242_v15, %v220_v59 }
 0x297   :  { %v246_v20 = vsel %vm95_vm6, %v244_v16, %v229_v60 }
 0x29b   :  { %v209_v5 = vpop.permute.xlu0 %208  ;;  %v378_v31 = vpop.permute.xlu2 %377 }
 0x29c   :  { %v218_v6 = vpop.permute.xlu1 %217  ;;  %v241_v7 = vsel %vm89_vm4, %v839_v0, %v209_v5 }
 0x29d   :  { %v243_v8 = vsel %vm92_vm5, %v241_v7, %v218_v6 }
 0x29e   :  { %v245_v12 = vsel %vm95_vm6, %v243_v8, %v227_v4 }
 0x2a3   :  { %v236_v10 = vpop.permute.xlu0 %235 }
 0x2a4   :  { %v238_v13 = vpop.permute.xlu1 %237  ;;  %v247_v14 = vsel %vm98_vm7, %v245_v12, %v236_v10 }
 0x2a5   :  { %643 = vmatmul.msk.f32.vlgmr.msra.gmra.mxu2 %vm102_vm8, %v247_v14  ;;  %v248_v24 = vsel %vm98_vm7, %v246_v20, %v238_v13 }
 0x2ab   :  { %v367_v19 = vpop.permute.xlu0 %366 }
 0x2ac   :  { %v392_v23 = vsel %vm92_vm5, %v390_v18, %v367_v19  ;;  %v376_v0 = vpop.permute.xlu1 %375 }
 0x2ad   :  { %644 = vmatmul.msk.f32.gmra.mxu2 %vm102_vm8, %v248_v24  ;;  %v394_v26 = vsel %vm95_vm6, %v392_v23, %v376_v0 }
 0x2ae   :  { %v396_v21 = vsel %vm98_vm7, %v394_v26, %v385_v22 }
 0x2af   :  { %647 = vmatmul.msk.f32.vlgmr.msrb.gmra.mxu1 %vm102_vm8, %v396_v21  ;;  %v33_v21 = vld [vmem:[%s1074_s1 + $0x98] sm:$0xff] }
 0x2b0   :  { %330 = vmatpush.msra.mxu3 %v33_v21  ;;  %622 = vmatpush.msrb.mxu2 %v33_v21 }
 0x2b3   :  { %v360_v27 = vpop.permute.xlu0 %359 }
 0x2b4   :  { %v391_v28 = vsel %vm89_vm4, %v861_v37, %v360_v27  ;;  %v369_v29 = vpop.permute.xlu1 %368  ;;  %v32_v27 = vld [vmem:[%s1074_s1 + $0x90] sm:$0xff] }
 0x2b5   :  { %v393_v30 = vsel %vm92_vm5, %v391_v28, %v369_v29  ;;  %331 = vmatpush.msra.mxu3 %v32_v27  ;;  %v31_v28 = vld [vmem:[%s1074_s1 + $0x88] sm:$0xff]  ;;  %623 = vmatpush.msrb.mxu2 %v32_v27  ;;  %v30_v29 = vld [vmem:[%s1074_s1 + $0x80] sm:$0xff] }
 0x2b6   :  { %v395_v32 = vsel %vm95_vm6, %v393_v30, %v378_v31  ;;  %v29_v30 = vld [vmem:[%s1074_s1 + $0x78] sm:$0xff] }
 0x2b7   :  { %332 = vmatpush.msra.mxu3 %v31_v28  ;;  %624 = vmatpush.msrb.mxu2 %v31_v28 }
 0x2b9   :  { %333 = vmatpush.msra.mxu3 %v30_v29  ;;  %625 = vmatpush.msrb.mxu2 %v30_v29 }
 0x2bb   :  { %v387_v33 = vpop.permute.xlu0 %386  ;;  %334 = vmatpush.msra.mxu3 %v29_v30  ;;  %626 = vmatpush.msrb.mxu2 %v29_v30 }
 0x2bc   :  { %v397_v34 = vsel %vm98_vm7, %v395_v32, %v387_v33 }
 0x2bd   :  { %648 = vmatmul.msk.f32.gmra.mxu1 %vm102_vm8, %v397_v34  ;;  %477 = vmatpush.msrb.mxu3 %v784_v61 }
 0x2bf   :  { %478 = vmatpush.msrb.mxu3 %v789_v62 }
 0x2c1   :  { %479 = vmatpush.msrb.mxu3 %v795_v63 }
 0x2c3   :  { %480 = vmatpush.msrb.mxu3 %v802_v1 }
 0x2c5   :  { %481 = vmatpush.msrb.mxu3 %v807_v2 }
 0x328   :  { %v273_v36 = vpop.f32.mrf.mxu2 }
 0x329   :  { %v274_v38 = vadd.f32 %v273_v36, %v943_v35 }
 0x32b   :  { %v281_v41 = vmul.f32 0.01, %v274_v38  ;;  %vm279_vm11 = vcmp.gt.f32.partialorder %v274_v38, 0.0 }
 0x32c   :  { %v421_v44 = vpop.f32.mrf.mxu1 }
 0x32d   :  { %v947_v43 = vsel %vm279_vm11, %v274_v38, %v281_v41  ;;  %v422_v46 = vadd.f32 %v421_v44, %v769_v40 }
 0x32e   :  { %v299_v48 = vrot.slane %v947_v43, 3  ;;  %v293_v49 = vrot.slane %v947_v43, 2  ;;  %v287_v52 = vrot.slane %v947_v43, 1  ;;  %v305_v12 = vrot.slane %v947_v43, 4 }
 0x32f   :  { %v429_v4 = vmul.f32 0.01, %v422_v46  ;;  %vm427_vm13 = vcmp.gt.f32.partialorder %v422_v46, 0.0 }
 0x330   :  { %v276_v37 = vpop.f32.mrf.mxu2 }
 0x331   :  { %v277_v42 = vadd.f32 %v276_v37, %v943_v35  ;;  %v431_v7 = vsel %vm427_vm13, %v422_v46, %v429_v4 }
 0x332   :  { %v441_v13 = vrot.slane %v431_v7, 2  ;;  %v435_v15 = vrot.slane %v431_v7, 1  ;;  %v447_v23 = vrot.slane %v431_v7, 3  ;;  %v453_v24 = vrot.slane %v431_v7, 4 }
 0x333   :  { %vm280_vm12 = vcmp.gt.f32.partialorder %v277_v42, 0.0  ;;  %v282_v45 = vmul.f32 0.01, %v277_v42 }
 0x335   :  { %v284_v47 = vsel %vm280_vm12, %v277_v42, %v282_v45 }
 0x336   :  { %v300_v50 = vrot.slane %v284_v47, 3  ;;  %v294_v51 = vrot.slane %v284_v47, 2  ;;  %v288_v53 = vrot.slane %v284_v47, 1  ;;  %v306_v9 = vrot.slane %v284_v47, 4 }
 0x337   :  { %v680_v47 = vmov -1.0  }
 0x338   :  { %v301_v59 = vsel %vm70_vm2, %v299_v48, %v300_v50  ;;  %v295_v60 = vsel %vm60_vm3, %v293_v49, %v294_v51  ;;  %v289_v3 = vsel %vm50_vm1, %v287_v52, %v288_v53  ;;  %v307_v18 = vsel %vm45_vm0, %v305_v12, %v306_v9 }
 0x339   :  { %302 = vrot.lane.b32.xlu0 %v301_v59, %s677_s15  ;;  %296 = vrot.lane.b32.xlu2 %v295_v60, %s678_s16 }
 0x33a   :  { %290 = vrot.lane.b32.xlu1 %v289_v3, %s676_s14  ;;  %v424_v5 = vpop.f32.mrf.mxu1 }
 0x33b   :  { %v425_v6 = vadd.f32 %v424_v5, %v769_v40 }
 0x33d   :  { %vm428_vm14 = vcmp.gt.f32.partialorder %v425_v6, 0.0  ;;  %v430_v8 = vmul.f32 0.01, %v425_v6 }
 0x33f   :  { %v432_v10 = vsel %vm428_vm14, %v425_v6, %v430_v8 }
 0x340   :  { %v442_v14 = vrot.slane %v432_v10, 2  ;;  %v436_v16 = vrot.slane %v432_v10, 1  ;;  %v448_v40 = vrot.slane %v432_v10, 3  ;;  %v454_v22 = vrot.slane %v432_v10, 4 }
 0x342   :  { %308 = vrot.lane.b32.xlu1 %v307_v18, %s679_s17  ;;  %v443_v19 = vsel %vm60_vm3, %v441_v13, %v442_v14  ;;  %v437_v20 = vsel %vm50_vm1, %v435_v15, %v436_v16  ;;  %v449_v0 = vsel %vm70_vm2, %v447_v23, %v448_v40  ;;  %v455_v26 = vsel %vm45_vm0, %v453_v24, %v454_v22 }
 0x343   :  { %444 = vrot.lane.b32.xlu0 %v443_v19, %s678_s16  ;;  %438 = vrot.lane.b32.xlu2 %v437_v20, %s676_s14 }
 0x34a   :  { %450 = vrot.lane.b32.xlu1 %v449_v0, %s677_s15 }
 0x34b   :  { %456 = vrot.lane.b32.xlu2 %v455_v26, %s679_s17 }
 0x393   :  { %v297_v31 = vpop.permute.xlu2 %296 }
 0x39d   :  { %v439_v38 = vpop.permute.xlu2 %438 }
 0x39e   :  { %v459_v1 = vsel %vm89_vm4, %v431_v7, %v439_v38 }
 0x3a5   :  { %v457_v42 = vpop.permute.xlu2 %456 }
 0x3ab   :  { %v303_v36 = vpop.permute.xlu0 %302 }
 0x3ac   :  { %v291_v32 = vpop.permute.xlu1 %290 }
 0x3ad   :  { %v311_v33 = vsel %vm89_vm4, %v947_v43, %v291_v32 }
 0x3ae   :  { %v312_v34 = vsel %vm92_vm5, %v311_v33, %v297_v31 }
 0x3af   :  { %v313_v41 = vsel %vm95_vm6, %v312_v34, %v303_v36 }
 0x3b4   :  { %v309_v61 = vpop.permute.xlu1 %308 }
 0x3b5   :  { %v314_v62 = vsel %vm98_vm7, %v313_v41, %v309_v61  ;;  %v445_v63 = vpop.permute.xlu0 %444 }
 0x3b6   :  { %645 = vmatmul.msk.f32.vlgmr.msra.gmra.mxu3 %vm102_vm8, %v314_v62  ;;  %v460_v2 = vsel %vm92_vm5, %v459_v1, %v445_v63 }
 0x3b7   :  { %654 = vmatpush.msra.mxu3 %v887_v54  ;;  %v35_v54 = vlaneseq }
 0x3b9   :  { %655 = vmatpush.msra.mxu3 %v893_v55  ;;  %v315_v55 = vperm.slane %v766_v39, 3  ;;  %v36_v45 = vand.u32 127, %v35_v54 }
 0x3bb   :  { %656 = vmatpush.msra.mxu3 %v899_v56  ;;  %vm37_vm15 = vcmp.lt.s32.totalorder %v36_v45, 4 }
 0x3bc   :  { %v451_v37 = vpop.permute.xlu1 %450  ;;  %v1010_v48 = vsel %vm37_vm15, 1.0, %v680_v47 }
 0x3bd   :  { %v461_v43 = vsel %vm95_vm6, %v460_v2, %v451_v37  ;;  %657 = vmatpush.msra.mxu3 %v906_v57 }
 0x3be   :  { %v462_v44 = vsel %vm98_vm7, %v461_v43, %v457_v42 }
 0x3bf   :  { %649 = vmatmul.msk.f32.vlgmr.msrb.gmra.mxu3 %vm102_vm8, %v462_v44 }
 0x3c0   :  { %658 = vmatpush.msra.mxu3 %v915_v58 }
 0x439   :  { %v336_v46 = vpop.f32.mrf.mxu3 }
 0x43a   :  { %v337_v56 = vadd.f32 %v336_v46, %v315_v55 }
 0x43c   :  { %668 = vtanh.f32 %v337_v56 }
 0x442   :  { %v669_v57 = vpop.eup %668  ;;  %v483_v49 = vpop.f32.mrf.mxu3 }
 0x443   :  { %v340_v50 = vmul.f32 %v669_v57, %v1010_v48  ;;  %v484_v58 = vadd.f32 %v483_v49, %v168_v11 }
 0x445   :  { %v341_v51 = vadd.f32 %v340_v50, %v825_v17  ;;  %670 = vtanh.f32 %v484_v58 }
 0x447   :  { %342 = vst.msk [vmem:[%s1076_s3] sm:$0xff] %vm89_vm4, %v341_v51 }
 0x44b   :  { %v671_v52 = vpop.eup %670 }
 0x44c   :  { %v487_v53 = vmul.f32 1.442695, %v671_v52 }
 0x44e   :  { %672 = vpow2.f32 %v487_v53 }
 0x454   :  { %v673_v59 = vpop.eup %672 }
 0x455   :  { %v1021_v60 = vmul.f32 %v673_v59, %v845_v25 }
 0x457   :  { %v491_v3 = vperm.slane %v1021_v60, 7  ;;  %v493_v4 = vrot.slane %v1021_v60, 4  ;;  %v490_v11 = vperm.slane %v1021_v60, 0 }
 0x459   :  { %v496_v17 = vsel %vm45_vm0, %v493_v4, %v491_v3  ;;  %v495_v8 = vsel %vm45_vm0, %v490_v11, %v493_v4 }
 0x45a   :  { %v518_v5 = vrot.slane %v496_v17, 3  ;;  %v509_v6 = vrot.slane %v496_v17, 2  ;;  %v500_v7 = vrot.slane %v496_v17, 1  ;;  %v508_v25 = vrot.slane %v495_v8, 2 }
 0x45b   :  { %v499_v9 = vrot.slane %v495_v8, 1  ;;  %v527_v10 = vrot.slane %v496_v17, 4  ;;  %v526_v14 = vrot.slane %v495_v8, 4  ;;  %v517_v15 = vrot.slane %v495_v8, 3 }
 0x45c   :  { %522 = vrot.lane.b32.xlu2 %v518_v5, %s677_s15  ;;  %513 = vrot.lane.b32.xlu1 %v509_v6, %s678_s16  ;;  %v510_v12 = vsel %vm60_vm3, %v508_v25, %v509_v6 }
 0x45d   :  { %504 = vrot.lane.b32.xlu0 %v500_v7, %s676_s14  ;;  %v501_v13 = vsel %vm50_vm1, %v499_v9, %v500_v7  ;;  %v528_v16 = vsel %vm45_vm0, %v526_v14, %v527_v10  ;;  %v519_v18 = vsel %vm70_vm2, %v517_v15, %v518_v5 }
 0x464   :  { %511 = vrot.lane.b32.xlu2 %v510_v12, %s678_s16  ;;  %502 = vrot.lane.b32.xlu1 %v501_v13, %s676_s14 }
 0x465   :  { %531 = vrot.lane.b32.xlu0 %v527_v10, %s679_s17 }
 0x46c   :  { %529 = vrot.lane.b32.xlu1 %v528_v16, %s679_s17 }
 0x46d   :  { %520 = vrot.lane.b32.xlu0 %v519_v18, %s677_s15 }
 0x4b6   :  { %v523_v22 = vpop.permute.xlu2 %522 }
 0x4be   :  { %v512_v28 = vpop.permute.xlu2 %511 }
 0x4ce   :  { %v514_v19 = vpop.permute.xlu1 %513 }
 0x4cf   :  { %v505_v20 = vpop.permute.xlu0 %504 }
 0x4d0   :  { %v536_v40 = vsel %vm89_vm4, %v496_v17, %v505_v20 }
 0x4d1   :  { %v538_v23 = vsel %vm92_vm5, %v536_v40, %v514_v19 }
 0x4d2   :  { %v540_v0 = vsel %vm95_vm6, %v538_v23, %v523_v22 }
 0x4d6   :  { %v503_v24 = vpop.permute.xlu1 %502 }
 0x4d7   :  { %v532_v26 = vpop.permute.xlu0 %531  ;;  %v535_v27 = vsel %vm89_vm4, %v495_v8, %v503_v24 }
 0x4d8   :  { %v542_v21 = vsel %vm98_vm7, %v540_v0, %v532_v26  ;;  %v537_v31 = vsel %vm92_vm5, %v535_v27, %v512_v28 }
 0x4d9   :  { %651 = vmatmul.msk.f32.vlgmr.msra.gmra.mxu3 %vm102_vm8, %v542_v21 }
 0x4de   :  { %v530_v29 = vpop.permute.xlu1 %529 }
 0x4df   :  { %v521_v30 = vpop.permute.xlu0 %520 }
 0x4e0   :  { %v539_v32 = vsel %vm95_vm6, %v537_v31, %v521_v30 }
 0x4e1   :  { %v541_v33 = vsel %vm98_vm7, %v539_v32, %v530_v29 }
 0x4e2   :  { %650 = vmatmul.msk.f32.vlgmr.msrb.gmra.mxu0 %vm102_vm8, %v541_v33 }
 0x55c   :  { %v569_v34 = vpop.f32.mrf.mxu3 }
 0x55d   :  { %v570_v36 = vadd.f32 %v569_v34, %v943_v35 }
 0x55f   :  { %vm573_vm9 = vcmp.gt.f32.partialorder %v570_v36, 0.0  ;;  %v575_v38 = vmul.f32 0.01, %v570_v36  ;;  %v566_v41 = vpop.f32.mrf.mxu0 }
 0x560   :  { %v567_v61 = vadd.f32 %v566_v41, %v943_v35 }
 0x561   :  { %v577_v62 = vsel %vm573_vm9, %v570_v36, %v575_v38 }
 0x562   :  { %vm572_vm10 = vcmp.gt.f32.partialorder %v567_v61, 0.0  ;;  %v574_v63 = vmul.f32 0.01, %v567_v61  ;;  %v593_v2 = vrot.slane %v577_v62, 3  ;;  %v587_v37 = vrot.slane %v577_v62, 2 }
 0x563   :  { %v581_v54 = vrot.slane %v577_v62, 1  ;;  %v599_v47 = vrot.slane %v577_v62, 4 }
 0x564   :  { %v576_v1 = vsel %vm572_vm10, %v567_v61, %v574_v63 }
 0x565   :  { %v592_v42 = vrot.slane %v576_v1, 3  ;;  %v586_v43 = vrot.slane %v576_v1, 2  ;;  %v580_v44 = vrot.slane %v576_v1, 1  ;;  %v598_v35 = vrot.slane %v576_v1, 4 }
 0x567   :  { %v594_v45 = vsel %vm70_vm2, %v592_v42, %v593_v2  ;;  %v588_v46 = vsel %vm60_vm3, %v586_v43, %v587_v37  ;;  %v582_v56 = vsel %vm50_vm1, %v580_v44, %v581_v54  ;;  %v600_v57 = vsel %vm45_vm0, %v598_v35, %v599_v47 }
 0x568   :  { %595 = vrot.lane.b32.xlu1 %v594_v45, %s677_s15  ;;  %589 = vrot.lane.b32.xlu0 %v588_v46, %s678_s16 }
 0x569   :  { %583 = vrot.lane.b32.xlu2 %v582_v56, %s676_s14 }
 0x571   :  { %601 = vrot.lane.b32.xlu2 %v600_v57, %s679_s17 }
 0x5c3   :  { %v584_v49 = vpop.permute.xlu2 %583 }
 0x5c4   :  { %v604_v50 = vsel %vm89_vm4, %v576_v1, %v584_v49 }
 0x5cb   :  { %v602_v53 = vpop.permute.xlu2 %601 }
 0x5da   :  { %v596_v58 = vpop.permute.xlu1 %595  ;;  %v590_v51 = vpop.permute.xlu0 %589 }
 0x5db   :  { %v605_v52 = vsel %vm92_vm5, %v604_v50, %v590_v51 }
 0x5dc   :  { %v606_v59 = vsel %vm95_vm6, %v605_v52, %v596_v58 }
 0x5dd   :  { %v607_v3 = vsel %vm98_vm7, %v606_v59, %v602_v53 }
 0x5de   :  { %652 = vmatmul.msk.f32.vlgmr.msrb.gmra.mxu2 %vm102_vm8, %v607_v3 }
 0x661   :  { %v628_v4 = vpop.f32.mrf.mxu2 }
 0x662   :  { %v629_v11 = vadd.f32 %v628_v4, %v315_v55 }
 0x664   :  { %674 = vtanh.f32 %v629_v11 }
 0x66a   :  { %v675_v17 = vpop.eup %674 }
 0x66b   :  { %v632_v5 = vmul.f32 %v675_v17, %v1010_v48 }
 0x66d   :  { %v633_v6 = vadd.f32 %v632_v5, %v1021_v60 }
 0x66f   :  { %653 = vst.msk [vmem:[%s1076_s3 + $0x8] sm:$0xff] %vm89_vm4, %v633_v6 }

</bundles_post_ra>
